<compile_context>
chip_gen: v6e
topology: v6e:2x2x1
jax: 0.10.0
libtpu: 0.0.40
codegen_flags: <defaults>
</compile_context>

<pallas_src>
import jax
import jax.numpy as jnp
from jax.experimental import pallas as pl
from jax.experimental.pallas import tpu as pltpu

BN_EPS = 1e-5
Z_DIM, H1_DIM, H2_DIM, OUT_DIM = 4, 64, 128, 312
HEAD_PAD = 384            # per-head padded width (multiple of 128)
HEAD_TOT = 2 * HEAD_PAD   # merged head width: [alpha | pad | beta | pad]
VMEM_LIMIT = 48 * 1024 * 1024   # explicit cap: fits v7x's 64 MiB physical VMEM


def _round_up(x, m):
    return ((x + m - 1) // m) * m


def _linear_k4(z, w_ref, b_ref):
    """K=4 'matmul' as 4 VPU broadcast FMAs (avoids a >95%-padded MXU pass)."""
    h = z[:, 0:1] * w_ref[0:1, :] + z[:, 1:2] * w_ref[1:2, :]
    h = h + z[:, 2:3] * w_ref[2:3, :] + z[:, 3:4] * w_ref[3:4, :]
    return h + b_ref[...]


def _inverse_linear(x):
    # InverseLinear(x) = 1/(1 - x + |x|) + x + |x| ; denominator >= 1 always.
    ax = jnp.abs(x)
    return 1.0 / (1.0 - x + ax) + x + ax


def _fused_bn(h, valid, inv_n, gamma, beta):
    """Training-mode BN over the batch axis as a fused scale/shift.

    `valid` masks padded rows (they contribute 0 to both sums).
    One-pass E[x], E[x^2]; variance clamped at 0.
    """
    hm = h * valid
    mean = jnp.sum(hm, axis=0, keepdims=True) * inv_n
    msq = jnp.sum(hm * h, axis=0, keepdims=True) * inv_n
    var = jnp.maximum(msq - mean * mean, 0.0)
    scale = gamma * jax.lax.rsqrt(var + BN_EPS)
    shift = beta - mean * scale
    return scale, shift


# --------------------------------------------------------------------------
# Fast path: single fused kernel (whole batch in one tile).
# --------------------------------------------------------------------------
def make_fused_kernel(n):
    inv_n = 1.0 / n

    def fused_kernel(z_ref, w1_ref, b1_ref, g1_ref, be1_ref,
                     w2_ref, b2_ref, g2_ref, be2_ref,
                     wh_ref, bh_ref, out_a_ref, out_b_ref):
        z = z_ref[...]
        rows = z.shape[0]
        row_id = jax.lax.broadcasted_iota(jnp.int32, (rows, 1), 0)
        valid = (row_id < n).astype(jnp.float32)

        h1 = _linear_k4(z, w1_ref, b1_ref)                            # (rows, 64)
        s1, t1 = _fused_bn(h1, valid, inv_n, g1_ref[...], be1_ref[...])
        a1 = jnp.maximum(h1 * s1 + t1, 0.0)

        h2 = jnp.dot(a1, w2_ref[...],
                     preferred_element_type=jnp.float32) + b2_ref[...]  # (rows, 128)
        s2, t2 = _fused_bn(h2, valid, inv_n, g2_ref[...], be2_ref[...])
        a2 = jnp.maximum(h2 * s2 + t2, 0.0)

        y = jnp.dot(a2, wh_ref[...],
                    preferred_element_type=jnp.float32) + bh_ref[...]   # (rows, 768)
        out_a_ref[...] = _inverse_linear(y[:, :OUT_DIM])
        out_b_ref[...] = _inverse_linear(y[:, HEAD_PAD:HEAD_PAD + OUT_DIM])

    return fused_kernel


# --------------------------------------------------------------------------
# Large-batch path, pass 1: BN1 statistics (tiled reduction over N).
# --------------------------------------------------------------------------
def make_stats1_kernel(n, tn):
    inv_n = 1.0 / n

    def stats1_kernel(z_ref, w1_ref, b1_ref, g1_ref, be1_ref,
                      s1_ref, t1_ref, sum_ref, sq_ref):
        i = pl.program_id(0)

        @pl.when(i == 0)
        def _():
            sum_ref[...] = jnp.zeros_like(sum_ref)
            sq_ref[...] = jnp.zeros_like(sq_ref)

        z = z_ref[...]
        row_id = jax.lax.broadcasted_iota(jnp.int32, (tn, 1), 0) + i * tn
        valid = (row_id < n).astype(jnp.float32)

        h1 = _linear_k4(z, w1_ref, b1_ref)
        hm = h1 * valid
        sum_ref[...] += jnp.sum(hm, axis=0, keepdims=True)
        sq_ref[...] += jnp.sum(hm * h1, axis=0, keepdims=True)

        @pl.when(i == pl.num_programs(0) - 1)
        def _():
            mean = sum_ref[...] * inv_n
            var = jnp.maximum(sq_ref[...] * inv_n - mean * mean, 0.0)
            scale = g1_ref[...] * jax.lax.rsqrt(var + BN_EPS)
            s1_ref[...] = scale
            t1_ref[...] = be1_ref[...] - mean * scale

    return stats1_kernel


# --------------------------------------------------------------------------
# Large-batch path, pass 2: BN2 statistics (needs BN1 scale/shift).
# --------------------------------------------------------------------------
def make_stats2_kernel(n, tn):
    inv_n = 1.0 / n

    def stats2_kernel(z_ref, w1_ref, b1_ref, s1_ref, t1_ref,
                      w2_ref, b2_ref, g2_ref, be2_ref,
                      s2_ref, t2_ref, sum_ref, sq_ref):
        i = pl.program_id(0)

        @pl.when(i == 0)
        def _():
            sum_ref[...] = jnp.zeros_like(sum_ref)
            sq_ref[...] = jnp.zeros_like(sq_ref)

        z = z_ref[...]
        row_id = jax.lax.broadcasted_iota(jnp.int32, (tn, 1), 0) + i * tn
        valid = (row_id < n).astype(jnp.float32)

        h1 = _linear_k4(z, w1_ref, b1_ref)
        a1 = jnp.maximum(h1 * s1_ref[...] + t1_ref[...], 0.0)
        h2 = jnp.dot(a1, w2_ref[...],
                     preferred_element_type=jnp.float32) + b2_ref[...]
        hm = h2 * valid
        sum_ref[...] += jnp.sum(hm, axis=0, keepdims=True)
        sq_ref[...] += jnp.sum(hm * h2, axis=0, keepdims=True)

        @pl.when(i == pl.num_programs(0) - 1)
        def _():
            mean = sum_ref[...] * inv_n
            var = jnp.maximum(sq_ref[...] * inv_n - mean * mean, 0.0)
            scale = g2_ref[...] * jax.lax.rsqrt(var + BN_EPS)
            s2_ref[...] = scale
            t2_ref[...] = be2_ref[...] - mean * scale

    return stats2_kernel


# --------------------------------------------------------------------------
# Large-batch path, pass 3: N-tiled forward, direct lane-aligned 312-wide
# outputs for each head (no padded slab, no wrapper column slices).
# --------------------------------------------------------------------------
def forward_kernel(z_ref, w1_ref, b1_ref, s1_ref, t1_ref,
                   w2_ref, b2_ref, s2_ref, t2_ref,
                   wh_ref, bh_ref, out_a_ref, out_b_ref):
    z = z_ref[...]                                                   # (tn, 4)

    h1 = _linear_k4(z, w1_ref, b1_ref)
    a1 = jnp.maximum(h1 * s1_ref[...] + t1_ref[...], 0.0)

    h2 = jnp.dot(a1, w2_ref[...],
                 preferred_element_type=jnp.float32) + b2_ref[...]
    a2 = jnp.maximum(h2 * s2_ref[...] + t2_ref[...], 0.0)

    # Merged alpha|beta head: (tn,128) @ (128,768) f32 -> f32.
    y = jnp.dot(a2, wh_ref[...],
                preferred_element_type=jnp.float32) + bh_ref[...]

    # Elementwise InverseLinear only on the valid (lane-aligned-start) slices.
    out_a_ref[...] = _inverse_linear(y[:, :OUT_DIM])
    out_b_ref[...] = _inverse_linear(y[:, HEAD_PAD:HEAD_PAD + OUT_DIM])


# --------------------------------------------------------------------------
# Wrappers
# --------------------------------------------------------------------------
def generator_detfwd(z, params, *, tile_n=1024, fast_path_rows=512):
    """Deterministic part (detfwd) of the Generator: returns (a, b)."""
    n = z.shape[0]
    n8 = _round_up(n, 8)
    p = params

    # ---- small-batch fast path: one fused kernel, one launch ----
    if n8 <= fast_path_rows:
        zp = jnp.pad(z, ((0, n8 - n), (0, 0))) if n8 != n else z
        vmem = pl.BlockSpec(memory_space=pltpu.MemorySpace.VMEM)
        out_a, out_b = pl.pallas_call(
            make_fused_kernel(n),
            out_shape=(jax.ShapeDtypeStruct((n8, OUT_DIM), jnp.float32),
                       jax.ShapeDtypeStruct((n8, OUT_DIM), jnp.float32)),
            in_specs=[vmem] * 11,
            out_specs=(vmem, vmem),
            compiler_params=pltpu.CompilerParams(vmem_limit_bytes=VMEM_LIMIT),
        )(zp, p["w1"], p["b1"], p["g1"], p["be1"],
          p["w2"], p["b2"], p["g2"], p["be2"], p["wh"], p["bh"])
        if n8 != n:
            out_a, out_b = out_a[:n], out_b[:n]
        return out_a, out_b

    # ---- large-batch path: tiled stats (2 reduction passes) + tiled forward ----
    # Tile chosen so the grid always has >= 2 steps (uses both TCs on v7x) and
    # stays small enough for v7x's 64 MiB VMEM at the explicit vmem limit.
    tn = min(tile_n, max(8, _round_up((n8 + 1) // 2, 8)))
    n_pad = _round_up(n8, tn)
    zp = jnp.pad(z, ((0, n_pad - n), (0, 0))) if n_pad != n else z
    grid = (n_pad // tn,)

    def resident(shape):
        return pl.BlockSpec(shape, lambda i: (0, 0))   # constant index -> stays in VMEM

    z_spec = pl.BlockSpec((tn, Z_DIM), lambda i: (i, 0))
    reduce_params = pltpu.CompilerParams(
        dimension_semantics=("arbitrary",), vmem_limit_bytes=VMEM_LIMIT)

    # Pass 1: BN1 scale/shift.
    s1, t1 = pl.pallas_call(
        make_stats1_kernel(n, tn),
        out_shape=(jax.ShapeDtypeStruct((1, H1_DIM), jnp.float32),
                   jax.ShapeDtypeStruct((1, H1_DIM), jnp.float32)),
        grid=grid,
        in_specs=[z_spec,
                  resident((Z_DIM, H1_DIM)), resident((1, H1_DIM)),
                  resident((1, H1_DIM)), resident((1, H1_DIM))],
        out_specs=(pl.BlockSpec((1, H1_DIM), lambda i: (0, 0)),
                   pl.BlockSpec((1, H1_DIM), lambda i: (0, 0))),
        scratch_shapes=[pltpu.VMEM((1, H1_DIM), jnp.float32),
                        pltpu.VMEM((1, H1_DIM), jnp.float32)],
        compiler_params=reduce_params,
    )(zp, p["w1"], p["b1"], p["g1"], p["be1"])

    # Pass 2: BN2 scale/shift (depends on BN1).
    s2, t2 = pl.pallas_call(
        make_stats2_kernel(n, tn),
        out_shape=(jax.ShapeDtypeStruct((1, H2_DIM), jnp.float32),
                   jax.ShapeDtypeStruct((1, H2_DIM), jnp.float32)),
        grid=grid,
        in_specs=[z_spec,
                  resident((Z_DIM, H1_DIM)), resident((1, H1_DIM)),
                  resident((1, H1_DIM)), resident((1, H1_DIM)),
                  resident((H1_DIM, H2_DIM)), resident((1, H2_DIM)),
                  resident((1, H2_DIM)), resident((1, H2_DIM))],
        out_specs=(pl.BlockSpec((1, H2_DIM), lambda i: (0, 0)),
                   pl.BlockSpec((1, H2_DIM), lambda i: (0, 0))),
        scratch_shapes=[pltpu.VMEM((1, H2_DIM), jnp.float32),
                        pltpu.VMEM((1, H2_DIM), jnp.float32)],
        compiler_params=reduce_params,
    )(zp, p["w1"], p["b1"], s1, t1, p["w2"], p["b2"], p["g2"], p["be2"])

    # Pass 3: heavy forward, direct 312-wide outputs per head.
    out_a, out_b = pl.pallas_call(
        forward_kernel,
        out_shape=(jax.ShapeDtypeStruct((n_pad, OUT_DIM), jnp.float32),
                   jax.ShapeDtypeStruct((n_pad, OUT_DIM), jnp.float32)),
        grid=grid,
        in_specs=[
            z_spec,
            resident((Z_DIM, H1_DIM)), resident((1, H1_DIM)),
            resident((1, H1_DIM)), resident((1, H1_DIM)),
            resident((H1_DIM, H2_DIM)), resident((1, H2_DIM)),
            resident((1, H2_DIM)), resident((1, H2_DIM)),
            resident((H2_DIM, HEAD_TOT)), resident((1, HEAD_TOT)),
        ],
        out_specs=(pl.BlockSpec((tn, OUT_DIM), lambda i: (i, 0)),
                   pl.BlockSpec((tn, OUT_DIM), lambda i: (i, 0))),
        compiler_params=pltpu.CompilerParams(
            dimension_semantics=("parallel",), vmem_limit_bytes=VMEM_LIMIT),
    )(zp, p["w1"], p["b1"], s1, t1, p["w2"], p["b2"], s2, t2, p["wh"], p["bh"])

    if n_pad != n:  # row slice only when the batch is not tile-aligned
        out_a, out_b = out_a[:n], out_b[:n]
    return out_a, out_b


def generator_forward(key, params, nsmpl):
    """Full forward: sample z ~ N(0,1), compute (a,b) in kernels, Beta sample."""
    kz, kbeta = jax.random.split(key)
    # TODO(synk): z could be generated in-kernel with pltpu.prng_seed +
    # pltpu.stateful_normal to skip one tiny HBM round-trip; kept in JAX here.
    z = jax.random.normal(kz, (nsmpl, Z_DIM), jnp.float32)
    a, b = generator_detfwd(z, params)
    # TODO(synk): Beta(a,b).rsample() (reparameterized gamma sampling) has no
    # Pallas primitive; done here in plain JAX (not reparameterized).
    samples = jax.random.beta(kbeta, a, b)
    return samples, a, b


def init_params(key):
    """Deterministic PyTorch-default-style init (uniform +-1/sqrt(fan_in))."""
    def linear(k, fin, fout):
        kw, kb = jax.random.split(k)
        bound = 1.0 / (fin ** 0.5)
        w = jax.random.uniform(kw, (fin, fout), jnp.float32, -bound, bound)
        b = jax.random.uniform(kb, (1, fout), jnp.float32, -bound, bound)
        return w, b

    k1, k2, ka, kb = jax.random.split(key, 4)
    w1, b1 = linear(k1, Z_DIM, H1_DIM)
    w2, b2 = linear(k2, H1_DIM, H2_DIM)
    wa, ba = linear(ka, H2_DIM, OUT_DIM)
    wb, bb = linear(kb, H2_DIM, OUT_DIM)

    # Merged, lane-padded head: [alpha | 0-pad | beta | 0-pad], f32 weights
    # (parity with the f32 PyTorch reference; the kernel is HBM-bound so the
    # extra MXU passes are free). Pad columns are zero and never stored.
    wh = jnp.zeros((H2_DIM, HEAD_TOT), jnp.float32)
    wh = wh.at[:, :OUT_DIM].set(wa).at[:, HEAD_PAD:HEAD_PAD + OUT_DIM].set(wb)
    bh = jnp.zeros((1, HEAD_TOT), jnp.float32)
    bh = bh.at[:, :OUT_DIM].set(ba).at[:, HEAD_PAD:HEAD_PAD + OUT_DIM].set(bb)

    return dict(
        w1=w1, b1=b1,
        g1=jnp.ones((1, H1_DIM), jnp.float32), be1=jnp.zeros((1, H1_DIM), jnp.float32),
        w2=w2, b2=b2,
        g2=jnp.ones((1, H2_DIM), jnp.float32), be2=jnp.zeros((1, H2_DIM), jnp.float32),
        wh=wh, bh=bh,
    )


if __name__ == "__main__":
    root = jax.random.PRNGKey(0)
    kparam, kfwd, kfwd2 = jax.random.split(root, 3)
    params = init_params(kparam)

    # Small batch (demo size) -> fused single-kernel fast path.
    nsmpl = 8
    samples, a, b = generator_forward(kfwd, params, nsmpl)
    samples = jax.block_until_ready(samples)

    assert samples.shape == (nsmpl, OUT_DIM)
    assert a.shape == (nsmpl, OUT_DIM) and b.shape == (nsmpl, OUT_DIM)
    assert bool(jnp.all(jnp.isfinite(a))) and bool(jnp.all(jnp.isfinite(b)))
    assert bool(jnp.all(a > 0.0)) and bool(jnp.all(b > 0.0))          # valid Beta params
    assert bool(jnp.all((samples >= 0.0) & (samples <= 1.0)))         # Beta support

    # Larger (non-tile-aligned) batch -> tiled stats + tiled forward path.
    nsmpl2 = 600
    samples2, a2, b2 = generator_forward(kfwd2, params, nsmpl2)
    samples2 = jax.block_until_ready(samples2)
    assert samples2.shape == (nsmpl2, OUT_DIM)
    assert bool(jnp.all(jnp.isfinite(a2))) and bool(jnp.all(jnp.isfinite(b2)))
    assert bool(jnp.all(a2 > 0.0)) and bool(jnp.all(b2 > 0.0))
    assert bool(jnp.all((samples2 >= 0.0) & (samples2 <= 1.0)))

    print("KERNEL_OK")
</pallas_src>

<mosaic_0001>
module attributes {stable_mosaic.version = 11 : i64} {
  func.func @fused_kernel(%arg0: memref<8x4xf32, #tpu.memory_space<vmem>>, %arg1: memref<4x64xf32, #tpu.memory_space<vmem>>, %arg2: memref<1x64xf32, #tpu.memory_space<vmem>>, %arg3: memref<1x64xf32, #tpu.memory_space<vmem>>, %arg4: memref<1x64xf32, #tpu.memory_space<vmem>>, %arg5: memref<64x128xf32, #tpu.memory_space<vmem>>, %arg6: memref<1x128xf32, #tpu.memory_space<vmem>>, %arg7: memref<1x128xf32, #tpu.memory_space<vmem>>, %arg8: memref<1x128xf32, #tpu.memory_space<vmem>>, %arg9: memref<128x768xf32, #tpu.memory_space<vmem>>, %arg10: memref<1x768xf32, #tpu.memory_space<vmem>>, %arg11: memref<8x312xf32, #tpu.memory_space<vmem>>, %arg12: memref<8x312xf32, #tpu.memory_space<vmem>>) attributes {dimension_semantics = [], scalar_prefetch = 0 : i64, scratch_operands = 0 : i64, tpu.core_type = #tpu.core_type<tc>} {
    %c0 = arith.constant 0 : index
    %c0_0 = arith.constant 0 : index
    %0 = vector.load %arg0[%c0, %c0_0] : memref<8x4xf32, #tpu.memory_space<vmem>>, vector<8x4xf32>
    %1 = tpu.iota {dimensions = array<i32: 0>} : vector<8x1xi32>
    %c8_i32 = arith.constant 8 : i32
    %2 = vector.broadcast %c8_i32 : i32 to vector<8x1xi32>
    %3 = arith.cmpi slt, %1, %2 : vector<8x1xi32>
    %4 = arith.extui %3 : vector<8x1xi1> to vector<8x1xi32>
    %5 = arith.sitofp %4 : vector<8x1xi32> to vector<8x1xf32>
    %6 = vector.extract_strided_slice %0 {offsets = [0, 0], sizes = [8, 1], strides = [1, 1]} : vector<8x4xf32> to vector<8x1xf32>
    %c0_1 = arith.constant 0 : index
    %c0_2 = arith.constant 0 : index
    %7 = vector.load %arg1[%c0_1, %c0_2] : memref<4x64xf32, #tpu.memory_space<vmem>>, vector<1x64xf32>
    %8 = vector.broadcast %6 : vector<8x1xf32> to vector<8x64xf32>
    %9 = vector.broadcast %7 : vector<1x64xf32> to vector<8x64xf32>
    %10 = arith.mulf %8, %9 : vector<8x64xf32>
    %11 = vector.extract_strided_slice %0 {offsets = [0, 1], sizes = [8, 1], strides = [1, 1]} : vector<8x4xf32> to vector<8x1xf32>
    %c1 = arith.constant 1 : index
    %c0_3 = arith.constant 0 : index
    %12 = vector.load %arg1[%c1, %c0_3] : memref<4x64xf32, #tpu.memory_space<vmem>>, vector<1x64xf32>
    %13 = vector.broadcast %11 : vector<8x1xf32> to vector<8x64xf32>
    %14 = vector.broadcast %12 : vector<1x64xf32> to vector<8x64xf32>
    %15 = arith.mulf %13, %14 : vector<8x64xf32>
    %16 = arith.addf %10, %15 : vector<8x64xf32>
    %17 = vector.extract_strided_slice %0 {offsets = [0, 2], sizes = [8, 1], strides = [1, 1]} : vector<8x4xf32> to vector<8x1xf32>
    %c2 = arith.constant 2 : index
    %c0_4 = arith.constant 0 : index
    %18 = vector.load %arg1[%c2, %c0_4] : memref<4x64xf32, #tpu.memory_space<vmem>>, vector<1x64xf32>
    %19 = vector.broadcast %17 : vector<8x1xf32> to vector<8x64xf32>
    %20 = vector.broadcast %18 : vector<1x64xf32> to vector<8x64xf32>
    %21 = arith.mulf %19, %20 : vector<8x64xf32>
    %22 = arith.addf %16, %21 : vector<8x64xf32>
    %23 = vector.extract_strided_slice %0 {offsets = [0, 3], sizes = [8, 1], strides = [1, 1]} : vector<8x4xf32> to vector<8x1xf32>
    %c3 = arith.constant 3 : index
    %c0_5 = arith.constant 0 : index
    %24 = vector.load %arg1[%c3, %c0_5] : memref<4x64xf32, #tpu.memory_space<vmem>>, vector<1x64xf32>
    %25 = vector.broadcast %23 : vector<8x1xf32> to vector<8x64xf32>
    %26 = vector.broadcast %24 : vector<1x64xf32> to vector<8x64xf32>
    %27 = arith.mulf %25, %26 : vector<8x64xf32>
    %28 = arith.addf %22, %27 : vector<8x64xf32>
    %c0_6 = arith.constant 0 : index
    %c0_7 = arith.constant 0 : index
    %29 = vector.load %arg2[%c0_6, %c0_7] : memref<1x64xf32, #tpu.memory_space<vmem>>, vector<1x64xf32>
    %30 = vector.broadcast %29 : vector<1x64xf32> to vector<8x64xf32>
    %31 = arith.addf %28, %30 : vector<8x64xf32>
    %c0_8 = arith.constant 0 : index
    %c0_9 = arith.constant 0 : index
    %32 = vector.load %arg3[%c0_8, %c0_9] : memref<1x64xf32, #tpu.memory_space<vmem>>, vector<1x64xf32>
    %c0_10 = arith.constant 0 : index
    %c0_11 = arith.constant 0 : index
    %33 = vector.load %arg4[%c0_10, %c0_11] : memref<1x64xf32, #tpu.memory_space<vmem>>, vector<1x64xf32>
    %34 = vector.broadcast %5 : vector<8x1xf32> to vector<8x64xf32>
    %35 = arith.mulf %31, %34 : vector<8x64xf32>
    %cst = arith.constant dense<0.000000e+00> : vector<64xf32>
    %36 = vector.multi_reduction <add>, %35, %cst [0] : vector<8x64xf32> to vector<64xf32>
    %37 = vector.shape_cast %36 : vector<64xf32> to vector<1x64xf32>
    %cst_12 = arith.constant 1.250000e-01 : f32
    %38 = vector.broadcast %cst_12 : f32 to vector<1x64xf32>
    %39 = arith.mulf %37, %38 : vector<1x64xf32>
    %40 = arith.mulf %35, %31 : vector<8x64xf32>
    %cst_13 = arith.constant dense<0.000000e+00> : vector<64xf32>
    %41 = vector.multi_reduction <add>, %40, %cst_13 [0] : vector<8x64xf32> to vector<64xf32>
    %42 = vector.shape_cast %41 : vector<64xf32> to vector<1x64xf32>
    %cst_14 = arith.constant 1.250000e-01 : f32
    %43 = vector.broadcast %cst_14 : f32 to vector<1x64xf32>
    %44 = arith.mulf %42, %43 : vector<1x64xf32>
    %45 = arith.mulf %39, %39 : vector<1x64xf32>
    %46 = arith.subf %44, %45 : vector<1x64xf32>
    %cst_15 = arith.constant 0.000000e+00 : f32
    %47 = vector.broadcast %cst_15 : f32 to vector<1x64xf32>
    %48 = arith.maximumf %46, %47 : vector<1x64xf32>
    %cst_16 = arith.constant 9.99999974E-6 : f32
    %49 = vector.broadcast %cst_16 : f32 to vector<1x64xf32>
    %50 = arith.addf %48, %49 : vector<1x64xf32>
    %51 = math.rsqrt %50 : vector<1x64xf32>
    %52 = arith.mulf %32, %51 : vector<1x64xf32>
    %53 = arith.mulf %39, %52 : vector<1x64xf32>
    %54 = arith.subf %33, %53 : vector<1x64xf32>
    %55 = vector.broadcast %52 : vector<1x64xf32> to vector<8x64xf32>
    %56 = arith.mulf %31, %55 : vector<8x64xf32>
    %57 = vector.broadcast %54 : vector<1x64xf32> to vector<8x64xf32>
    %58 = arith.addf %56, %57 : vector<8x64xf32>
    %cst_17 = arith.constant 0.000000e+00 : f32
    %59 = vector.broadcast %cst_17 : f32 to vector<8x64xf32>
    %60 = arith.maximumf %58, %59 : vector<8x64xf32>
    %c0_18 = arith.constant 0 : index
    %c0_19 = arith.constant 0 : index
    %61 = vector.load %arg5[%c0_18, %c0_19] : memref<64x128xf32, #tpu.memory_space<vmem>>, vector<64x128xf32>
    %cst_20 = arith.constant dense<0.000000e+00> : vector<8x128xf32>
    %62 = tpu.matmul %60, %61, %cst_20 {dimension_numbers = #tpu.dot_dimension_numbers<[1], [0], [0], [1], [0, 0, 1, 1], [], []>} : vector<8x64xf32>, vector<64x128xf32>, vector<8x128xf32> -> vector<8x128xf32>
    %c0_21 = arith.constant 0 : index
    %c0_22 = arith.constant 0 : index
    %63 = vector.load %arg6[%c0_21, %c0_22] : memref<1x128xf32, #tpu.memory_space<vmem>>, vector<1x128xf32>
    %64 = vector.broadcast %63 : vector<1x128xf32> to vector<8x128xf32>
    %65 = arith.addf %62, %64 : vector<8x128xf32>
    %c0_23 = arith.constant 0 : index
    %c0_24 = arith.constant 0 : index
    %66 = vector.load %arg7[%c0_23, %c0_24] : memref<1x128xf32, #tpu.memory_space<vmem>>, vector<1x128xf32>
    %c0_25 = arith.constant 0 : index
    %c0_26 = arith.constant 0 : index
    %67 = vector.load %arg8[%c0_25, %c0_26] : memref<1x128xf32, #tpu.memory_space<vmem>>, vector<1x128xf32>
    %68 = vector.broadcast %5 : vector<8x1xf32> to vector<8x128xf32>
    %69 = arith.mulf %65, %68 : vector<8x128xf32>
    %cst_27 = arith.constant dense<0.000000e+00> : vector<128xf32>
    %70 = vector.multi_reduction <add>, %69, %cst_27 [0] : vector<8x128xf32> to vector<128xf32>
    %71 = vector.shape_cast %70 : vector<128xf32> to vector<1x128xf32>
    %cst_28 = arith.constant 1.250000e-01 : f32
    %72 = vector.broadcast %cst_28 : f32 to vector<1x128xf32>
    %73 = arith.mulf %71, %72 : vector<1x128xf32>
    %74 = arith.mulf %69, %65 : vector<8x128xf32>
    %cst_29 = arith.constant dense<0.000000e+00> : vector<128xf32>
    %75 = vector.multi_reduction <add>, %74, %cst_29 [0] : vector<8x128xf32> to vector<128xf32>
    %76 = vector.shape_cast %75 : vector<128xf32> to vector<1x128xf32>
    %cst_30 = arith.constant 1.250000e-01 : f32
    %77 = vector.broadcast %cst_30 : f32 to vector<1x128xf32>
    %78 = arith.mulf %76, %77 : vector<1x128xf32>
    %79 = arith.mulf %73, %73 : vector<1x128xf32>
    %80 = arith.subf %78, %79 : vector<1x128xf32>
    %cst_31 = arith.constant 0.000000e+00 : f32
    %81 = vector.broadcast %cst_31 : f32 to vector<1x128xf32>
    %82 = arith.maximumf %80, %81 : vector<1x128xf32>
    %cst_32 = arith.constant 9.99999974E-6 : f32
    %83 = vector.broadcast %cst_32 : f32 to vector<1x128xf32>
    %84 = arith.addf %82, %83 : vector<1x128xf32>
    %85 = math.rsqrt %84 : vector<1x128xf32>
    %86 = arith.mulf %66, %85 : vector<1x128xf32>
    %87 = arith.mulf %73, %86 : vector<1x128xf32>
    %88 = arith.subf %67, %87 : vector<1x128xf32>
    %89 = vector.broadcast %86 : vector<1x128xf32> to vector<8x128xf32>
    %90 = arith.mulf %65, %89 : vector<8x128xf32>
    %91 = vector.broadcast %88 : vector<1x128xf32> to vector<8x128xf32>
    %92 = arith.addf %90, %91 : vector<8x128xf32>
    %cst_33 = arith.constant 0.000000e+00 : f32
    %93 = vector.broadcast %cst_33 : f32 to vector<8x128xf32>
    %94 = arith.maximumf %92, %93 : vector<8x128xf32>
    %c0_34 = arith.constant 0 : index
    %c0_35 = arith.constant 0 : index
    %95 = vector.load %arg9[%c0_34, %c0_35] : memref<128x768xf32, #tpu.memory_space<vmem>>, vector<128x768xf32>
    %cst_36 = arith.constant dense<0.000000e+00> : vector<8x768xf32>
    %96 = tpu.matmul %94, %95, %cst_36 {dimension_numbers = #tpu.dot_dimension_numbers<[1], [0], [0], [1], [0, 0, 1, 1], [], []>} : vector<8x128xf32>, vector<128x768xf32>, vector<8x768xf32> -> vector<8x768xf32>
    %c0_37 = arith.constant 0 : index
    %c0_38 = arith.constant 0 : index
    %97 = vector.load %arg10[%c0_37, %c0_38] : memref<1x768xf32, #tpu.memory_space<vmem>>, vector<1x768xf32>
    %98 = vector.broadcast %97 : vector<1x768xf32> to vector<8x768xf32>
    %99 = arith.addf %96, %98 : vector<8x768xf32>
    %100 = vector.extract_strided_slice %99 {offsets = [0, 0], sizes = [8, 312], strides = [1, 1]} : vector<8x768xf32> to vector<8x312xf32>
    %101 = math.absf %100 : vector<8x312xf32>
    %cst_39 = arith.constant 1.000000e+00 : f32
    %102 = vector.broadcast %cst_39 : f32 to vector<8x312xf32>
    %103 = arith.subf %102, %100 : vector<8x312xf32>
    %104 = arith.addf %103, %101 : vector<8x312xf32>
    %cst_40 = arith.constant 1.000000e+00 : f32
    %105 = vector.broadcast %cst_40 : f32 to vector<8x312xf32>
    %106 = arith.divf %105, %104 : vector<8x312xf32>
    %107 = arith.addf %106, %100 : vector<8x312xf32>
    %108 = arith.addf %107, %101 : vector<8x312xf32>
    %c0_41 = arith.constant 0 : index
    %c0_42 = arith.constant 0 : index
    %109 = vector.load %arg11[%c0_41, %c0_42] : memref<8x312xf32, #tpu.memory_space<vmem>>, vector<8x312xf32>
    tpu.vector_store %arg11[%c0_41, %c0_42], %108 {strides = array<i32>} : memref<8x312xf32, #tpu.memory_space<vmem>>, vector<8x312xf32>,
    %110 = vector.extract_strided_slice %99 {offsets = [0, 384], sizes = [8, 312], strides = [1, 1]} : vector<8x768xf32> to vector<8x312xf32>
    %111 = math.absf %110 : vector<8x312xf32>
    %cst_43 = arith.constant 1.000000e+00 : f32
    %112 = vector.broadcast %cst_43 : f32 to vector<8x312xf32>
    %113 = arith.subf %112, %110 : vector<8x312xf32>
    %114 = arith.addf %113, %111 : vector<8x312xf32>
    %cst_44 = arith.constant 1.000000e+00 : f32
    %115 = vector.broadcast %cst_44 : f32 to vector<8x312xf32>
    %116 = arith.divf %115, %114 : vector<8x312xf32>
    %117 = arith.addf %116, %110 : vector<8x312xf32>
    %118 = arith.addf %117, %111 : vector<8x312xf32>
    %c0_45 = arith.constant 0 : index
    %c0_46 = arith.constant 0 : index
    %119 = vector.load %arg12[%c0_45, %c0_46] : memref<8x312xf32, #tpu.memory_space<vmem>>, vector<8x312xf32>
    tpu.vector_store %arg12[%c0_45, %c0_46], %118 {strides = array<i32>} : memref<8x312xf32, #tpu.memory_space<vmem>>, vector<8x312xf32>,
    return
  }
}

</mosaic_0001>

<bundles_post_ra>
// kernel: tpu_custom_call.1
= control target key start
LH: loop header
LB: loop body
LE: loop exit
PB: predicated region body
PF: predicated region fallthrough
CT: control target
= control target key end

     0   :  { %18 = vsyncpa [#allocation3], 0  ;;  %s1043_s0 = inlined_call_operand.vmem [shape: f32[8,4], index: 0, kind: input, shape index: {}]   ;;  %s1044_s1 = inlined_call_operand.vmem [shape: f32[4,64], index: 1, kind: input, shape index: {}]   ;;  %s1045_s2 = inlined_call_operand.vmem [shape: f32[1,64], index: 2, kind: input, shape index: {}]   ;;  %s1046_s3 = inlined_call_operand.vmem [shape: f32[1,64], index: 3, kind: input, shape index: {}]   ;;  %s1047_s4 = inlined_call_operand.vmem [shape: f32[1,64], index: 4, kind: input, shape index: {}]   ;;  %s1048_s5 = inlined_call_operand.hbm [shape: f32[64,128], index: 5, kind: input, shape index: {}]   ;;  %s1049_s6 = inlined_call_operand.vmem [shape: f32[1,128], index: 6, kind: input, shape index: {}]   ;;  %s1050_s7 = inlined_call_operand.vmem [shape: f32[1,128], index: 7, kind: input, shape index: {}]   ;;  %s1051_s8 = inlined_call_operand.vmem [shape: f32[1,128], index: 8, kind: input, shape index: {}]   ;;  %s1052_s9 = inlined_call_operand.hbm [shape: f32[128,768], index: 9, kind: input, shape index: {}]   ;;  %s1053_s10 = inlined_call_operand.vmem [shape: f32[1,768], index: 10, kind: input, shape index: {}]   ;;  %s1054_s11 = inlined_call_operand.hbm [shape: f32[8,312], index: 11, kind: output, shape index: {0}]   ;;  %s1055_s12 = inlined_call_operand.hbm [shape: f32[8,312], index: 12, kind: output, shape index: {1}]  }
   0x1   :  { %19 = vsyncpa [#allocation6], 0 }
   0x2   :  { %20 = vsyncpa [#allocation4], 0 }
   0x3   :  { %21 = vsyncpa [#allocation9], 0  ;;  %s879_s21 = smov [#allocation2]  }
   0x4   :  { %s37_s22 = sshll.u32 %s879_s21, 4  ;;  %s38_s22 = int_to_ptr.vmem [resolvable:$true] %s37_s22 }
   0x5   :  { %s799_s23 = scalar_lea.vmem %s38_s22, 1024  ;;  %p804_p1 = scmp.lt.s32.totalorder %s38_s22, %s38_s22 }
   0x6   :  { %p800_p0 = scmp.ne.s32.totalorder %s38_s22, %s799_s23  ;;  %p805_p2 = scmp.lt.s32.totalorder %s799_s23, %s799_s23 }
   0x8   :  { %p806_p3 = por %p805_p2, %p804_p1 }
   0xa   :  { %p807_p4 = pnand %p806_p3, %p800_p0 }
   0xc   :  { %810 = shalt.err (!%p807_p4)
}
   0xd   :  { %s880_s24 = smov 128   ;;  %s881_s25 = smov 8  }
   0xe   :  { %43 = dma.hbm_to_vmem [thread:$0]  %s1048_s5, 1024, %s38_s22, [#allocation3], %s880_s24, %s880_s24, %s881_s25  }
   0xf   :  { %s882_s28 = smov [#allocation5]  }
  0x10   :  { %s55_s29 = sshll.u32 %s882_s28, 4  ;;  %s56_s29 = int_to_ptr.vmem [resolvable:$true] %s55_s29 }
  0x11   :  { %s819_s30 = scalar_lea.vmem %s56_s29, 12288  ;;  %p824_p6 = scmp.lt.s32.totalorder %s56_s29, %s56_s29 }
  0x12   :  { %p820_p5 = scmp.ne.s32.totalorder %s56_s29, %s819_s30  ;;  %p825_p7 = scmp.lt.s32.totalorder %s819_s30, %s819_s30 }
  0x14   :  { %p826_p8 = por %p825_p7, %p824_p6 }
  0x16   :  { %p827_p9 = pnand %p826_p8, %p820_p5 }
  0x18   :  { %830 = shalt.err (!%p827_p9)
}
  0x19   :  { %s883_s13 = smov 768   ;;  %s884_s14 = smov 48  }
  0x1a   :  { %61 = dma.hbm_to_vmem [thread:$0]  %s1052_s9, 12288, %s56_s29, [#allocation6], %s883_s13, %s883_s13, %s884_s14  }
  0x1b   :  { %871 = dma.done.wait [#allocation3], 1024  }
  0x1c   :  { %872 = vsyncadd [#allocation3], 4294966272 }
  0x1d   :  { %873 = dma.done.wait [#allocation6], 12288  }
  0x1e   :  { %874 = vsyncadd [#allocation6], 4294955008  ;;  %v885_v0 = vmov 0   ;;  %v886_v1 = vmov 2   ;;  %v70_v2 = vld [vmem:[%s1043_s0] sm:$0xff]  ;;  %v887_v3 = vmov 1   ;;  %v158_v52 = vlaneseq }
  0x1f   :  { %770 = vset.pattern.permute.xlu0 %v885_v0  ;;  %772 = vset.pattern.permute.xlu1 %v886_v1  ;;  %v888_v4 = vmov 3   ;;  %v179_v5 = vld [vmem:[#allocation2 + $0x38] sm:$0xff]  ;;  %v889_v6 = vmov 0.0   ;;  %v178_v7 = vld [vmem:[#allocation2 + $0x30] sm:$0xff]  ;;  %vm890_vm0 = vmmov 0   ;;  %v177_v8 = vld [vmem:[#allocation2 + $0x28] sm:$0xff] }
  0x20   :  { %79 = vperm.xlu0 %770, %v70_v2   ;;  %100 = vperm.xlu1 %772, %v70_v2   ;;  %v176_v9 = vld [vmem:[#allocation2 + $0x20] sm:$0xff]  ;;  %v175_v10 = vld [vmem:[#allocation2 + $0x18] sm:$0xff]  ;;  %v174_v11 = vld [vmem:[#allocation2 + $0x10] sm:$0xff]  ;;  %vm131_vm1 = vcmask 523264   ;;  %v994_v53 = vshrl.u32 %v158_v52, 7  ;;  %vm665_vm2 = vcmask 457728  }
  0x21   :  { %737 = vmatprep.subr.mxu0 %v889_v6  ;;  %753 = vmatprep.mubr.msk.f32.mxu0 %vm890_vm0, %v889_v6  ;;  %v173_v12 = vld [vmem:[#allocation2 + $0x8] sm:$0xff]  ;;  %v172_v13 = vld [vmem:[#allocation2] sm:$0xff] }
  0x22   :  { %738 = vmatpush3.msra.mxu0 %v179_v5  ;;  %493 = vmatprep.mubr.f32.mxu1 %v889_v6  ;;  %v721_v16 = vld [vmem:[%s1044_s1] ss:$0 sm:$0xff]  ;;  %v722_v17 = vld [vmem:[%s1044_s1 + $0x1] ss:$0 sm:$0xff]  ;;  %v723_v18 = vld [vmem:[%s1044_s1 + $0x2] ss:$0 sm:$0xff] }
  0x23   :  { %739 = vmatprep.subr.mxu0 %v889_v6  ;;  %v724_v20 = vld [vmem:[%s1044_s1 + $0x3] ss:$0 sm:$0xff]  ;;  %v725_v28 = vld [vmem:[%s1045_s2] ss:$0 sm:$0xff]  ;;  %v1000_v55 = vsub.s32 0, %v994_v53  ;;  %v386_v5 = vld [vmem:[#allocation5 + $0x2a8] sm:$0xff] }
  0x24   :  { %771 = vset.pattern.permute.xlu0 %v887_v3  ;;  %773 = vset.pattern.permute.xlu1 %v888_v4  ;;  %v128_v54 = vld [vmem:[%s1046_s3] sm:$0x1]  ;;  %v391_v3 = vld [vmem:[#allocation5 + $0x2d0] sm:$0xff]  ;;  %v322_v52 = vld [vmem:[#allocation5 + $0xa8] sm:$0xff] }
  0x25   :  { %89 = vperm.xlu0 %771, %v70_v2   ;;  %111 = vperm.xlu1 %773, %v70_v2   ;;  %v129_v58 = vld [vmem:[%s1047_s4] sm:$0x1]  ;;  %v392_v2 = vld [vmem:[#allocation5 + $0x2d8] sm:$0xff] }
  0x26   :  { %740 = vmatpush3.msra.mxu0 %v178_v7  ;;  %429 = vmatprep.subr.mxu1 %v392_v2  ;;  %v393_v7 = vld [vmem:[#allocation5 + $0x2e0] sm:$0xff]  ;;  %v304_v2 = vld [vmem:[#allocation5 + $0x18] sm:$0xff] }
  0x27   :  { %741 = vmatprep.subr.mxu0 %v889_v6  ;;  %430 = vmatpush1.msra.mxu1 %v391_v3  ;;  %v301_v3 = vld [vmem:[#allocation5] sm:$0xff] }
  0x28   :  { %742 = vmatpush3.msra.mxu0 %v177_v8  ;;  %v385_v8 = vld [vmem:[#allocation5 + $0x2a0] sm:$0xff]  ;;  %431 = vmatprep.subr.mxu1 %v386_v5  ;;  %v396_v5 = vld [vmem:[#allocation5 + $0x2f8] sm:$0xff] }
  0x29   :  { %774 = vset.pattern.permute.xlu0 %v888_v4  ;;  %743 = vmatprep.subr.mxu0 %v889_v6  ;;  %v394_v4 = vld [vmem:[#allocation5 + $0x2e8] sm:$0xff] }
  0x2a   :  { %744 = vmatpush3.msra.mxu0 %v176_v9  ;;  %v388_v9 = vld [vmem:[#allocation5 + $0x2b8] sm:$0xff]  ;;  %432 = vmatpush1.msra.mxu1 %v385_v8 }
  0x2b   :  { %745 = vmatprep.subr.mxu0 %v889_v6 }
  0x2c   :  { %746 = vmatpush3.msra.mxu0 %v175_v10  ;;  %v380_v10 = vld [vmem:[#allocation5 + $0x278] sm:$0xff] }
  0x2d   :  { %747 = vmatprep.subr.mxu0 %v889_v6  ;;  %433 = vmatprep.subr.mxu1 %v380_v10 }
  0x2e   :  { %748 = vmatpush3.msra.mxu0 %v174_v11  ;;  %v387_v11 = vld [vmem:[#allocation5 + $0x2b0] sm:$0xff] }
  0x2f   :  { %749 = vmatprep.subr.mxu0 %v889_v6 }
  0x30   :  { %750 = vmatpush3.msra.mxu0 %v173_v12  ;;  %v379_v12 = vld [vmem:[#allocation5 + $0x270] sm:$0xff] }
  0x31   :  { %751 = vmatprep.subr.mxu0 %v889_v6  ;;  %434 = vmatpush1.msra.mxu1 %v379_v12 }
  0x32   :  { %752 = vmatpush3.msra.mxu0 %v172_v13  ;;  %v382_v13 = vld [vmem:[#allocation5 + $0x288] sm:$0xff] }
  0x33   :  { %500 = vmatprep.subr.mxu0 %v394_v4  ;;  %v303_v4 = vld [vmem:[#allocation5 + $0x10] sm:$0xff] }
  0x9b   :  { %v80_v14 = vpop.permute.xlu0 %79  ;;  %v101_v15 = vpop.permute.xlu1 %100 }
  0x9c   :  { %v86_v22 = vmul.f32 %v721_v16, %v80_v14  ;;  %v107_v24 = vmul.f32 %v723_v18, %v101_v15  ;;  %v374_v14 = vld [vmem:[#allocation5 + $0x248] sm:$0xff]  ;;  %v381_v15 = vld [vmem:[#allocation5 + $0x280] sm:$0xff]  ;;  %v376_v16 = vld [vmem:[#allocation5 + $0x258] sm:$0xff] }
  0x9d   :  { %v375_v18 = vld [vmem:[#allocation5 + $0x250] sm:$0xff]  ;;  %435 = vmatprep.subr.mxu1 %v374_v14 }
  0xa0   :  { %v90_v19 = vpop.permute.xlu0 %89  ;;  %v112_v21 = vpop.permute.xlu1 %111 }
  0xa1   :  { %v96_v23 = vmul.f32 %v722_v17, %v90_v19  ;;  %v118_v26 = vmul.f32 %v724_v20, %v112_v21  ;;  %v373_v17 = vld [vmem:[#allocation5 + $0x240] sm:$0xff]  ;;  %v368_v19 = vld [vmem:[#allocation5 + $0x218] sm:$0xff]  ;;  %v370_v20 = vld [vmem:[#allocation5 + $0x228] sm:$0xff] }
  0xa2   :  { %v367_v21 = vld [vmem:[#allocation5 + $0x210] sm:$0xff]  ;;  %436 = vmatpush1.msra.mxu1 %v373_v17 }
  0xa3   :  { %v97_v25 = vadd.f32 %v96_v23, %v86_v22  ;;  %v369_v22 = vld [vmem:[#allocation5 + $0x220] sm:$0xff]  ;;  %v362_v23 = vld [vmem:[#allocation5 + $0x1e8] sm:$0xff]  ;;  %437 = vmatprep.subr.mxu1 %v368_v19 }
  0xa4   :  { %438 = vmatpush1.msra.mxu1 %v367_v21 }
  0xa5   :  { %v108_v27 = vadd.f32 %v107_v24, %v97_v25  ;;  %v364_v24 = vld [vmem:[#allocation5 + $0x1f8] sm:$0xff]  ;;  %v361_v25 = vld [vmem:[#allocation5 + $0x1e0] sm:$0xff]  ;;  %439 = vmatprep.subr.mxu1 %v362_v23 }
  0xa6   :  { %440 = vmatpush1.msra.mxu1 %v361_v25 }
  0xa7   :  { %v119_v29 = vadd.f32 %v118_v26, %v108_v27  ;;  %v363_v26 = vld [vmem:[#allocation5 + $0x1f0] sm:$0xff]  ;;  %v356_v27 = vld [vmem:[#allocation5 + $0x1b8] sm:$0xff] }
  0xa8   :  { %441 = vmatprep.subr.mxu1 %v356_v27 }
  0xa9   :  { %v127_v30 = vadd.f32 %v725_v28, %v119_v29  ;;  %v358_v28 = vld [vmem:[#allocation5 + $0x1c8] sm:$0xff]  ;;  %v355_v29 = vld [vmem:[#allocation5 + $0x1b0] sm:$0xff] }
  0xaa   :  { %442 = vmatpush1.msra.mxu1 %v355_v29 }
  0xab   :  { %v132_v31 = vsel %vm131_vm1, %v127_v30, 0.0  ;;  %v140_v32 = vmul.f32 %v127_v30, %v127_v30 }
  0xac   :  { %v133_v33 = vrot.slane %v132_v31, 4 }
  0xad   :  { %v141_v34 = vsel %vm131_vm1, %v140_v32, 0.0  ;;  %v352_v32 = vld [vmem:[#allocation5 + $0x198] sm:$0xff] }
  0xae   :  { %v134_v35 = vadd.f32 %v133_v33, %v132_v31  ;;  %v142_v36 = vrot.slane %v141_v34, 4  ;;  %v350_v31 = vld [vmem:[#allocation5 + $0x188] sm:$0xff]  ;;  %v349_v33 = vld [vmem:[#allocation5 + $0x180] sm:$0xff] }
  0xaf   :  { %443 = vmatprep.subr.mxu1 %v350_v31 }
  0xb0   :  { %v135_v37 = vrot.slane %v134_v35, 2  ;;  %v143_v38 = vadd.f32 %v142_v36, %v141_v34  ;;  %v351_v34 = vld [vmem:[#allocation5 + $0x190] sm:$0xff]  ;;  %v346_v36 = vld [vmem:[#allocation5 + $0x168] sm:$0xff]  ;;  %444 = vmatpush1.msra.mxu1 %v349_v33  ;;  %v261_v33 = vld [vmem:[%s1051_s8] sm:$0x1] }
  0xb2   :  { %v136_v39 = vadd.f32 %v135_v37, %v134_v35  ;;  %v144_v40 = vrot.slane %v143_v38, 2  ;;  %v344_v35 = vld [vmem:[#allocation5 + $0x158] sm:$0xff]  ;;  %v343_v37 = vld [vmem:[#allocation5 + $0x150] sm:$0xff] }
  0xb3   :  { %445 = vmatprep.subr.mxu1 %v344_v35 }
  0xb4   :  { %v137_v41 = vrot.slane %v136_v39, 1  ;;  %v145_v42 = vadd.f32 %v144_v40, %v143_v38  ;;  %v345_v38 = vld [vmem:[#allocation5 + $0x160] sm:$0xff]  ;;  %v340_v40 = vld [vmem:[#allocation5 + $0x138] sm:$0xff]  ;;  %446 = vmatpush1.msra.mxu1 %v343_v37 }
  0xb6   :  { %v138_v43 = vadd.f32 %v137_v41, %v136_v39  ;;  %v146_v44 = vrot.slane %v145_v42, 1  ;;  %v338_v39 = vld [vmem:[#allocation5 + $0x128] sm:$0xff]  ;;  %v337_v41 = vld [vmem:[#allocation5 + $0x120] sm:$0xff] }
  0xb7   :  { %447 = vmatprep.subr.mxu1 %v338_v39 }
  0xb8   :  { %v139_v45 = vmul.f32 0.125, %v138_v43  ;;  %v147_v46 = vadd.f32 %v146_v44, %v145_v42  ;;  %v339_v42 = vld [vmem:[#allocation5 + $0x130] sm:$0xff]  ;;  %v332_v43 = vld [vmem:[#allocation5 + $0xf8] sm:$0xff]  ;;  %v334_v44 = vld [vmem:[#allocation5 + $0x108] sm:$0xff]  ;;  %448 = vmatpush1.msra.mxu1 %v337_v41 }
  0xb9   :  { %449 = vmatprep.subr.mxu1 %v332_v43  ;;  %v395_v41 = vld [vmem:[#allocation5 + $0x2f0] sm:$0xff]  ;;  %v389_v43 = vld [vmem:[#allocation5 + $0x2c0] sm:$0xff] }
  0xba   :  { %v148_v47 = vmul.f32 0.125, %v147_v46  ;;  %v149_v48 = vmul.f32 %v139_v45, %v139_v45  ;;  %v333_v46 = vld [vmem:[#allocation5 + $0x100] sm:$0xff] }
  0xbc   :  { %v150_v49 = vsub.f32 %v148_v47, %v149_v48  ;;  %v326_v47 = vld [vmem:[#allocation5 + $0xc8] sm:$0xff]  ;;  %v328_v48 = vld [vmem:[#allocation5 + $0xd8] sm:$0xff] }
  0xbe   :  { %v151_v50 = vmax.f32 %v150_v49, 0.0  ;;  %v325_v49 = vld [vmem:[#allocation5 + $0xc0] sm:$0xff] }
  0xc0   :  { %v152_v51 = vadd.f32 1e-05, %v151_v50  ;;  %v327_v50 = vld [vmem:[#allocation5 + $0xd0] sm:$0xff] }
  0xc2   :  { %775 = vrsqrt.f32 %v152_v51  ;;  %v320_v51 = vld [vmem:[#allocation5 + $0x98] sm:$0xff] }
  0xcf   :  { %v776_v56 = vpop.eup %775 }
  0xd0   :  { %v154_v57 = vmul.f32 %v776_v56, %v128_v54  ;;  %v319_v54 = vld [vmem:[#allocation5 + $0x90] sm:$0xff]  ;;  %v321_v56 = vld [vmem:[#allocation5 + $0xa0] sm:$0xff] }
  0xd2   :  { %v155_v59 = vmul.f32 %v154_v57, %v139_v45  ;;  %v161_v60 = vrot.slane %v154_v57, %v1000_v55  ;;  %v331_v45 = vld [vmem:[#allocation5 + $0xf0] sm:$0xff]  ;;  %v314_v57 = vld [vmem:[#allocation5 + $0x68] sm:$0xff] }
  0xd3   :  { %450 = vmatpush1.msra.mxu1 %v331_v45  ;;  %v383_v45 = vld [vmem:[#allocation5 + $0x290] sm:$0xff] }
  0xd4   :  { %v156_v61 = vsub.f32 %v129_v58, %v155_v59  ;;  %v163_v62 = vmul.f32 %v161_v60, %v127_v30  ;;  %v357_v30 = vld [vmem:[#allocation5 + $0x1c0] sm:$0xff]  ;;  %451 = vmatprep.subr.mxu1 %v326_v47  ;;  %v316_v58 = vld [vmem:[#allocation5 + $0x78] sm:$0xff]  ;;  %v315_v60 = vld [vmem:[#allocation5 + $0x70] sm:$0xff] }
  0xd5   :  { %452 = vmatpush1.msra.mxu1 %v325_v49  ;;  %v313_v59 = vld [vmem:[#allocation5 + $0x60] sm:$0xff]  ;;  %v371_v49 = vld [vmem:[#allocation5 + $0x230] sm:$0xff] }
  0xd6   :  { %v168_v63 = vrot.slane %v156_v61, %v1000_v55  ;;  %453 = vmatprep.subr.mxu1 %v320_v51  ;;  %v308_v61 = vld [vmem:[#allocation5 + $0x38] sm:$0xff]  ;;  %v377_v47 = vld [vmem:[#allocation5 + $0x260] sm:$0xff] }
  0xd7   :  { %454 = vmatpush1.msra.mxu1 %v319_v54  ;;  %v365_v51 = vld [vmem:[#allocation5 + $0x200] sm:$0xff]  ;;  %v359_v54 = vld [vmem:[#allocation5 + $0x1d0] sm:$0xff] }
  0xd8   :  { %v170_v0 = vadd.f32 %v168_v63, %v163_v62  ;;  %v310_v62 = vld [vmem:[#allocation5 + $0x48] sm:$0xff]  ;;  %455 = vmatprep.subr.mxu1 %v314_v57  ;;  %v307_v63 = vld [vmem:[#allocation5 + $0x30] sm:$0xff]  ;;  %v348_v57 = vld [vmem:[#allocation5 + $0x178] sm:$0xff] }
  0xd9   :  { %456 = vmatpush1.msra.mxu1 %v313_v59  ;;  %v342_v59 = vld [vmem:[#allocation5 + $0x148] sm:$0xff] }
  0xda   :  { %v171_v1 = vmax.f32 %v170_v0, 0.0  ;;  %v309_v0 = vld [vmem:[#allocation5 + $0x40] sm:$0xff]  ;;  %457 = vmatprep.subr.mxu1 %v308_v61  ;;  %v336_v61 = vld [vmem:[#allocation5 + $0x118] sm:$0xff] }
  0xdb   :  { %458 = vmatpush1.msra.mxu1 %v307_v63  ;;  %v330_v63 = vld [vmem:[#allocation5 + $0xe8] sm:$0xff] }
  0xdc   :  { %754 = vmatmul.mubr.msk.f32.vlgmr.msra.gmra.mxu0 %vm131_vm1, %v171_v1  ;;  %v302_v1 = vld [vmem:[#allocation5 + $0x8] sm:$0xff] }
  0xdd   :  { %564 = vmatprep.mubr.f32.mxu0 %v889_v6  ;;  %501 = vmatpush1.msra.mxu0 %v393_v7  ;;  %v726_v7 = vld [vmem:[%s1049_s6] ss:$0 sm:$0xff] }
  0xde   :  { %502 = vmatprep.subr.mxu0 %v388_v9  ;;  %459 = vmatprep.subr.mxu1 %v302_v1  ;;  %v324_v1 = vld [vmem:[#allocation5 + $0xb8] sm:$0xff] }
  0xdf   :  { %503 = vmatpush1.msra.mxu0 %v387_v11  ;;  %460 = vmatpush1.msra.mxu1 %v301_v3  ;;  %v318_v3 = vld [vmem:[#allocation5 + $0x88] sm:$0xff] }
  0xe0   :  { %504 = vmatprep.subr.mxu0 %v382_v13  ;;  %571 = vmatprep.subr.mxu1 %v396_v5  ;;  %v312_v5 = vld [vmem:[#allocation5 + $0x58] sm:$0xff] }
  0xe1   :  { %505 = vmatpush1.msra.mxu0 %v381_v15 }
  0xe2   :  { %506 = vmatprep.subr.mxu0 %v376_v16 }
  0xe3   :  { %507 = vmatpush1.msra.mxu0 %v375_v18 }
  0xe4   :  { %508 = vmatprep.subr.mxu0 %v370_v20 }
  0xe5   :  { %509 = vmatpush1.msra.mxu0 %v369_v22 }
  0xe6   :  { %510 = vmatprep.subr.mxu0 %v364_v24 }
  0xe7   :  { %511 = vmatpush1.msra.mxu0 %v363_v26 }
  0xe8   :  { %512 = vmatprep.subr.mxu0 %v358_v28 }
  0xe9   :  { %513 = vmatpush1.msra.mxu0 %v357_v30  ;;  %v260_v30 = vld [vmem:[%s1050_s7] sm:$0x1] }
  0xea   :  { %514 = vmatprep.subr.mxu0 %v352_v32 }
  0xeb   :  { %515 = vmatpush1.msra.mxu0 %v351_v34 }
  0xec   :  { %516 = vmatprep.subr.mxu0 %v346_v36 }
  0xed   :  { %517 = vmatpush1.msra.mxu0 %v345_v38 }
  0xee   :  { %518 = vmatprep.subr.mxu0 %v340_v40 }
  0xef   :  { %519 = vmatpush1.msra.mxu0 %v339_v42  ;;  %v390_v42 = vld [vmem:[#allocation5 + $0x2c8] sm:$0xff] }
  0xf0   :  { %520 = vmatprep.subr.mxu0 %v334_v44  ;;  %v384_v44 = vld [vmem:[#allocation5 + $0x298] sm:$0xff] }
  0xf1   :  { %521 = vmatpush1.msra.mxu0 %v333_v46  ;;  %v378_v46 = vld [vmem:[#allocation5 + $0x268] sm:$0xff] }
  0xf2   :  { %522 = vmatprep.subr.mxu0 %v328_v48  ;;  %v372_v48 = vld [vmem:[#allocation5 + $0x238] sm:$0xff] }
  0xf3   :  { %523 = vmatpush1.msra.mxu0 %v327_v50  ;;  %v366_v50 = vld [vmem:[#allocation5 + $0x208] sm:$0xff] }
  0xf4   :  { %524 = vmatprep.subr.mxu0 %v322_v52  ;;  %v360_v52 = vld [vmem:[#allocation5 + $0x1d8] sm:$0xff] }
  0xf5   :  { %525 = vmatpush1.msra.mxu0 %v321_v56  ;;  %v353_v56 = vld [vmem:[#allocation5 + $0x1a0] sm:$0xff] }
  0xf6   :  { %526 = vmatprep.subr.mxu0 %v316_v58  ;;  %v347_v58 = vld [vmem:[#allocation5 + $0x170] sm:$0xff] }
  0xf7   :  { %527 = vmatpush1.msra.mxu0 %v315_v60  ;;  %v341_v60 = vld [vmem:[#allocation5 + $0x140] sm:$0xff] }
  0xf8   :  { %528 = vmatprep.subr.mxu0 %v310_v62  ;;  %v335_v62 = vld [vmem:[#allocation5 + $0x110] sm:$0xff] }
  0xf9   :  { %529 = vmatpush1.msra.mxu0 %v309_v0  ;;  %v329_v0 = vld [vmem:[#allocation5 + $0xe0] sm:$0xff] }
  0xfa   :  { %530 = vmatprep.subr.mxu0 %v304_v2  ;;  %v323_v2 = vld [vmem:[#allocation5 + $0xb0] sm:$0xff] }
  0xfb   :  { %531 = vmatpush1.msra.mxu0 %v303_v4  ;;  %v317_v4 = vld [vmem:[#allocation5 + $0x80] sm:$0xff] }
 0x19c   :  { %v256_v8 = vpop.f32.mrf.mxu0 }
 0x19d   :  { %v257_v9 = vadd.f32 %v726_v7, %v256_v8  ;;  %v311_v7 = vld [vmem:[#allocation5 + $0x50] sm:$0xff]  ;;  %v306_v8 = vld [vmem:[#allocation5 + $0x28] sm:$0xff] }
 0x19e   :  { %v755_v10 = vpop.f32.mrf.mxu0 }
 0x19f   :  { %v263_v11 = vrot.slane %v257_v9, 4  ;;  %v270_v12 = vmul.f32 %v257_v9, %v257_v9  ;;  %v409_v10 = vsub.s32 2, %v994_v53 }
 0x1a1   :  { %v264_v13 = vadd.f32 %v263_v11, %v257_v9  ;;  %v271_v14 = vrot.slane %v270_v12, 4  ;;  %v397_v11 = vld [vmem:[%s1053_s10] sm:$0x3f]  ;;  %s891_s10 = smov [#allocation7]  }
 0x1a2   :  { %s697_s13 = sshll.u32 %s891_s10, 4  ;;  %s698_s13 = int_to_ptr.vmem [resolvable:$true] %s697_s13 }
 0x1a3   :  { %v265_v15 = vrot.slane %v264_v13, 2  ;;  %v272_v16 = vadd.f32 %v271_v14, %v270_v12  ;;  %v405_v12 = vsub.s32 1, %v994_v53  ;;  %v402_v14 = vrot.slane %v397_v11, %v1000_v55  ;;  %s831_s14 = scalar_lea.vmem %s698_s13, 384  ;;  %p836_p11 = scmp.lt.s32.totalorder %s698_s13, %s698_s13 }
 0x1a4   :  { %p832_p10 = scmp.ne.s32.totalorder %s698_s13, %s831_s14  ;;  %p837_p12 = scmp.lt.s32.totalorder %s831_s14, %s831_s14 }
 0x1a5   :  { %v266_v17 = vadd.f32 %v265_v15, %v264_v13  ;;  %v273_v18 = vrot.slane %v272_v16, 2  ;;  %v413_v13 = vsub.s32 3, %v994_v53  ;;  %v410_v15 = vrot.slane %v397_v11, %v409_v10 }
 0x1a6   :  { %p838_p13 = por %p837_p12, %p836_p11 }
 0x1a7   :  { %v267_v19 = vrot.slane %v266_v17, 1  ;;  %v274_v20 = vadd.f32 %v273_v18, %v272_v16  ;;  %v406_v18 = vrot.slane %v397_v11, %v405_v12 }
 0x1a8   :  { %p839_p0 = pnand %p838_p13, %p832_p10 }
 0x1a9   :  { %v268_v21 = vadd.f32 %v267_v19, %v266_v17  ;;  %v275_v22 = vrot.slane %v274_v20, 1  ;;  %v414_v19 = vrot.slane %v397_v11, %v413_v13 }
 0x1ab   :  { %v276_v23 = vadd.f32 %v275_v22, %v274_v20  ;;  %v269_v24 = vmul.f32 0.125, %v268_v21 }
 0x1ad   :  { %v277_v25 = vmul.f32 0.125, %v276_v23  ;;  %v278_v26 = vmul.f32 %v269_v24, %v269_v24 }
 0x1af   :  { %v279_v27 = vsub.f32 %v277_v25, %v278_v26 }
 0x1b1   :  { %v280_v28 = vmax.f32 %v279_v27, 0.0 }
 0x1b3   :  { %v281_v29 = vadd.f32 1e-05, %v280_v28 }
 0x1b5   :  { %777 = vrsqrt.f32 %v281_v29 }
 0x1c2   :  { %v778_v31 = vpop.eup %777 }
 0x1c3   :  { %v283_v32 = vmul.f32 %v778_v31, %v260_v30 }
 0x1c5   :  { %v284_v34 = vmul.f32 %v283_v32, %v269_v24  ;;  %v290_v35 = vrot.slane %v283_v32, %v1000_v55 }
 0x1c7   :  { %v285_v36 = vsub.f32 %v261_v33, %v284_v34  ;;  %v292_v37 = vmul.f32 %v290_v35, %v257_v9  ;;  %v305_v9 = vld [vmem:[#allocation5 + $0x20] sm:$0xff] }
 0x1c9   :  { %v297_v38 = vrot.slane %v285_v36, %v1000_v55 }
 0x1cb   :  { %v299_v39 = vadd.f32 %v297_v38, %v292_v37 }
 0x1cd   :  { %v1020_v40 = vmax.f32 %v299_v39, 0.0 }
 0x1cf   :  { %494 = vmatmul.mubr.f32.vlgmr.msra.gmra.mxu1 %v1020_v40  ;;  %565 = vmatmul.mubr.f32.vlgmr.msra.gmra.mxu0 %v1020_v40 }
 0x1d0   :  { %572 = vmatpush1.msra.mxu1 %v395_v41  ;;  %635 = vmatprep.mubr.f32.mxu1 %v889_v6  ;;  %v354_v6 = vld [vmem:[#allocation5 + $0x1a8] sm:$0xff] }
 0x1d1   :  { %573 = vmatprep.subr.mxu1 %v390_v42 }
 0x1d2   :  { %574 = vmatpush1.msra.mxu1 %v389_v43 }
 0x1d3   :  { %575 = vmatprep.subr.mxu1 %v384_v44 }
 0x1d4   :  { %576 = vmatpush1.msra.mxu1 %v383_v45 }
 0x1d5   :  { %577 = vmatprep.subr.mxu1 %v378_v46 }
 0x1d6   :  { %578 = vmatpush1.msra.mxu1 %v377_v47  ;;  %v417_v47 = vsub.s32 4, %v994_v53 }
 0x1d7   :  { %579 = vmatprep.subr.mxu1 %v372_v48 }
 0x1d8   :  { %580 = vmatpush1.msra.mxu1 %v371_v49 }
 0x1d9   :  { %581 = vmatprep.subr.mxu1 %v366_v50  ;;  %v421_v50 = vsub.s32 5, %v994_v53 }
 0x1da   :  { %582 = vmatpush1.msra.mxu1 %v365_v51  ;;  %v418_v51 = vrot.slane %v397_v11, %v417_v47 }
 0x1db   :  { %583 = vmatprep.subr.mxu1 %v360_v52 }
 0x1dc   :  { %584 = vmatpush1.msra.mxu1 %v359_v54 }
 0x1dd   :  { %585 = vmatprep.subr.mxu1 %v354_v6 }
 0x1de   :  { %586 = vmatpush1.msra.mxu1 %v353_v56 }
 0x1df   :  { %587 = vmatprep.subr.mxu1 %v348_v57 }
 0x1e0   :  { %588 = vmatpush1.msra.mxu1 %v347_v58 }
 0x1e1   :  { %589 = vmatprep.subr.mxu1 %v342_v59 }
 0x1e2   :  { %590 = vmatpush1.msra.mxu1 %v341_v60 }
 0x1e3   :  { %591 = vmatprep.subr.mxu1 %v336_v61 }
 0x1e4   :  { %592 = vmatpush1.msra.mxu1 %v335_v62 }
 0x1e5   :  { %593 = vmatprep.subr.mxu1 %v330_v63 }
 0x1e6   :  { %594 = vmatpush1.msra.mxu1 %v329_v0 }
 0x1e7   :  { %595 = vmatprep.subr.mxu1 %v324_v1 }
 0x1e8   :  { %596 = vmatpush1.msra.mxu1 %v323_v2 }
 0x1e9   :  { %597 = vmatprep.subr.mxu1 %v318_v3 }
 0x1ea   :  { %598 = vmatpush1.msra.mxu1 %v317_v4 }
 0x1eb   :  { %599 = vmatprep.subr.mxu1 %v312_v5 }
 0x1ec   :  { %600 = vmatpush1.msra.mxu1 %v311_v7 }
 0x1ed   :  { %601 = vmatprep.subr.mxu1 %v306_v8 }
 0x1ee   :  { %602 = vmatpush1.msra.mxu1 %v305_v9 }
 0x1ef   :  { %636 = vmatmul.mubr.f32.vlgmr.msra.gmra.mxu1 %v1020_v40 }
 0x28f   :  { %v495_v16 = vpop.f32.mrf.mxu1  ;;  %v566_v17 = vpop.f32.mrf.mxu0 }
 0x290   :  { %v496_v20 = vadd.f32 %v495_v16, %v402_v14  ;;  %v567_v21 = vadd.f32 %v566_v17, %v410_v15 }
 0x291   :  { %v497_v22 = vpop.f32.mrf.mxu1  ;;  %v568_v23 = vpop.f32.mrf.mxu0 }
 0x292   :  { %v642_v24 = vand.u32 2147483647, %v496_v20  ;;  %v645_v25 = vsub.f32 1.0, %v496_v20  ;;  %v644_v26 = vand.u32 2147483647, %v567_v21  ;;  %v647_v27 = vsub.f32 1.0, %v567_v21 }
 0x293   :  { %v498_v28 = vadd.f32 %v497_v22, %v406_v18  ;;  %v569_v29 = vadd.f32 %v568_v23, %v414_v19 }
 0x294   :  { %v648_v30 = vadd.f32 %v645_v25, %v642_v24  ;;  %v650_v31 = vadd.f32 %v647_v27, %v644_v26 }
 0x295   :  { %v643_v32 = vand.u32 2147483647, %v498_v28  ;;  %v646_v33 = vsub.f32 1.0, %v498_v28  ;;  %v667_v55 = vand.u32 2147483647, %v569_v29  ;;  %v670_v34 = vsub.f32 1.0, %v569_v29 }
 0x296   :  { %779 = vrcp.f32 %v648_v30 }
 0x297   :  { %781 = vrcp.f32 %v650_v31  ;;  %v649_v35 = vadd.f32 %v646_v33, %v643_v32  ;;  %v673_v36 = vadd.f32 %v670_v34, %v667_v55 }
 0x299   :  { %783 = vrcp.f32 %v649_v35 }
 0x29a   :  { %785 = vrcp.f32 %v673_v36 }
 0x2a3   :  { %v780_v37 = vpop.eup %779 }
 0x2a4   :  { %v782_v38 = vpop.eup %781  ;;  %v657_v39 = vadd.f32 %v780_v37, %v496_v20 }
 0x2a5   :  { %v659_v40 = vadd.f32 %v782_v38, %v567_v21 }
 0x2a6   :  { %v784_v41 = vpop.eup %783  ;;  %v660_v42 = vadd.f32 %v657_v39, %v642_v24 }
 0x2a7   :  { %v786_v43 = vpop.eup %785  ;;  %v662_v44 = vadd.f32 %v659_v40, %v644_v26  ;;  %v658_v45 = vadd.f32 %v784_v41, %v498_v28 }
 0x2a8   :  { %663 = vst [vmem:[#allocation7] sm:$0xff] %v660_v42  ;;  %v682_v46 = vadd.f32 %v786_v43, %v569_v29 }
 0x2a9   :  { %v661_v48 = vadd.f32 %v658_v45, %v643_v32  ;;  %666 = vst.msk [vmem:[#allocation7 + $0x10] sm:$0xff] %vm665_vm2, %v662_v44 }
 0x2aa   :  { %v685_v49 = vadd.f32 %v682_v46, %v667_v55 }
 0x2ab   :  { %664 = vst [vmem:[#allocation7 + $0x8] sm:$0xff] %v661_v48 }
 0x2ac   :  { %688 = vst [vmem:[#allocation8] sm:$0xff] %v685_v49 }
 0x2ad   :  { %842 = shalt.err (!%p839_p0)
}
 0x2ae   :  { %700 = dma.vmem_to_hbm [thread:$0]  %s698_s13, 384, %s1054_s11, [#allocation4]   ;;  %v422_v52 = vrot.slane %v397_v11, %v421_v50 }
 0x2af   :  { %v637_v54 = vpop.f32.mrf.mxu1  ;;  %s892_s5 = smov [#allocation8]  }
 0x2b0   :  { %v638_v6 = vadd.f32 %v637_v54, %v418_v51  ;;  %s707_s17 = sshll.u32 %s892_s5, 4  ;;  %s708_s17 = int_to_ptr.vmem [resolvable:$true] %s707_s17 }
 0x2b1   :  { %v639_v56 = vpop.f32.mrf.mxu1  ;;  %s851_s11 = scalar_lea.vmem %s708_s17, 384  ;;  %p856_p2 = scmp.lt.s32.totalorder %s708_s17, %s708_s17 }
 0x2b2   :  { %v668_v57 = vand.u32 2147483647, %v638_v6  ;;  %v671_v53 = vsub.f32 1.0, %v638_v6  ;;  %v640_v58 = vadd.f32 %v639_v56, %v422_v52  ;;  %p852_p1 = scmp.ne.s32.totalorder %s708_s17, %s851_s11  ;;  %p857_p3 = scmp.lt.s32.totalorder %s851_s11, %s851_s11 }
 0x2b4   :  { %v674_v59 = vadd.f32 %v671_v53, %v668_v57  ;;  %v669_v60 = vand.u32 2147483647, %v640_v58  ;;  %v672_v61 = vsub.f32 1.0, %v640_v58  ;;  %p858_p4 = por %p857_p3, %p856_p2 }
 0x2b6   :  { %787 = vrcp.f32 %v674_v59  ;;  %v675_v62 = vadd.f32 %v672_v61, %v669_v60  ;;  %p859_p5 = pnand %p858_p4, %p852_p1 }
 0x2b8   :  { %789 = vrcp.f32 %v675_v62 }
 0x2c3   :  { %v788_v63 = vpop.eup %787 }
 0x2c4   :  { %v683_v0 = vadd.f32 %v788_v63, %v638_v6 }
 0x2c5   :  { %v790_v1 = vpop.eup %789 }
 0x2c6   :  { %v686_v2 = vadd.f32 %v683_v0, %v668_v57  ;;  %v684_v3 = vadd.f32 %v790_v1, %v640_v58 }
 0x2c8   :  { %689 = vst [vmem:[#allocation8 + $0x8] sm:$0xff] %v686_v2  ;;  %v687_v4 = vadd.f32 %v684_v3, %v669_v60 }
 0x2ca   :  { %690 = vst.msk [vmem:[#allocation8 + $0x10] sm:$0xff] %vm665_vm2, %v687_v4 }
 0x2cb   :  { %862 = shalt.err (!%p859_p5)
}
 0x2cc   :  { %710 = dma.vmem_to_hbm [thread:$0]  %s708_s17, 384, %s1055_s12, [#allocation9]  }
 0x2cd   :  { %875 = dma.done.wait [#allocation4], 384  }
 0x2ce   :  { %876 = vsyncadd [#allocation4], 4294966912 }
 0x2cf   :  { %877 = dma.done.wait [#allocation9], 384  }
 0x2d0   :  { %878 = vsyncadd [#allocation9], 4294966912 }
 0x2d1   :  { %717 = vsyncpa [#allocation3], 1 }
 0x2d2   :  { %718 = vsyncpa [#allocation6], 1 }
 0x2d3   :  { %719 = vsyncpa [#allocation4], 1 }
 0x2d4   :  { %720 = vsyncpa [#allocation9], 1 }

</bundles_post_ra>
